<compile_context>
chip_gen: v5e
topology: v5e:2x2
jax: 0.10.0
libtpu: 0.0.40
codegen_flags: <defaults>
</compile_context>

<pallas_src>
import math

import jax
import jax.numpy as jnp
from jax.experimental import pallas as pl
from jax.experimental.pallas import tpu as pltpu

_WEIGHTS = (1.0, 0.1, 0.2, 0.3, 0.4, 0.5)   # [out, gt_pre4, gt_pre3, gt_pre2, gt_pre1, gt_pre0]
_SMOOTH = 1e-5
_LANES = 128
_MAX_TILE_ROWS = 1024                       # biggest row-tile we ever take per step
_INPUT_VMEM_BUDGET = 12 * 1024 * 1024       # bytes for double-buffered input tiles

# Packed accumulator row layout (axis 1 of the output):
_ROW_BCE = 0            # weighted sum_k w_k * (t*log p_k + (1-t)*log(1-p_k))   [un-negated]
_ROW_TSUM = 1           # sum of target
_ROW_INTER = 2          # rows 2..7  : sum of p_k * t
_ROW_PSUM = 8           # rows 8..13 : sum of p_k
_N_ROWS = 14


def _cdiv(a, b):
    return -(-a // b)


def _round_up(a, b):
    return _cdiv(a, b) * b


def _gt_bcedice_kernel(t_ref, p0_ref, p1_ref, p2_ref, p3_ref, p4_ref, p5_ref, acc_ref):
    """Accumulate lane-partial sums for one (core, row-tile) grid point.

    Inputs:  (B, TR, 128) tiles (target + 6 predictions), any float dtype.
    Output:  acc_ref (1, 14, B, 128) f32 per-core accumulator, resident across the
             inner ("arbitrary") reduction axis.
    """
    r = pl.program_id(1)

    @pl.when(r == 0)
    def _init():
        acc_ref[...] = jnp.zeros_like(acc_ref)

    neg100 = jnp.float32(-100.0)
    one = jnp.float32(1.0)

    # Target tile: loaded and reduced once, reused by all 6 predictions.
    t = t_ref[...].astype(jnp.float32)                          # (B, TR, 128)
    acc_ref[0, _ROW_TSUM] = acc_ref[0, _ROW_TSUM] + jnp.sum(t, axis=1)

    # Weighted BCE partial kept in a register across the 6 predictions; one store at the end.
    bce_part = acc_ref[0, _ROW_BCE]                             # (B, 128)

    pred_refs = (p0_ref, p1_ref, p2_ref, p3_ref, p4_ref, p5_ref)
    for k, (w, p_ref) in enumerate(zip(_WEIGHTS, pred_refs)):
        p = p_ref[...].astype(jnp.float32)
        # BCE element with torch.nn.BCELoss' log clamp at -100 (valid for soft labels too).
        log_p = jnp.maximum(jnp.log(p), neg100)
        log_1p = jnp.maximum(jnp.log(one - p), neg100)
        nll = log_1p + t * (log_p - log_1p)                     # == t*log p + (1-t)*log(1-p)
        # Reduce over the rows (sublane) axis only (XLU); cross-lane reduce deferred to wrapper.
        bce_part = bce_part + jnp.float32(w) * jnp.sum(nll, axis=1)
        acc_ref[0, _ROW_INTER + k] = acc_ref[0, _ROW_INTER + k] + jnp.sum(p * t, axis=1)
        acc_ref[0, _ROW_PSUM + k] = acc_ref[0, _ROW_PSUM + k] + jnp.sum(p, axis=1)

    acc_ref[0, _ROW_BCE] = bce_part


def gt_bce_dice_loss(pre, out, target):
    """pre: tuple/list of 5 NCHW predictions (gt_pre4..gt_pre0); out, target: NCHW."""
    preds = (out,) + tuple(pre)
    assert len(preds) == 6
    B = out.shape[0]
    N = math.prod(out.shape[1:])                       # per-sample element count (C*H*W)

    itemsize = max(jnp.dtype(a.dtype).itemsize for a in preds + (target,))
    rows_needed = _cdiv(N, _LANES)

    # Tile rows: largest multiple of 8 (<= _MAX_TILE_ROWS) such that double-buffered tiles
    # of the 7 inputs stay within the VMEM budget; never larger than the problem itself.
    bytes_per_row_db = 2 * 7 * B * _LANES * itemsize
    tr_budget = max(8, (_INPUT_VMEM_BUDGET // bytes_per_row_db) // 8 * 8)
    tile_rows = min(_MAX_TILE_ROWS, tr_budget, _round_up(rows_needed, 8))

    # Megacore split (v7x): parallel axis over 2 cores when there is enough work.
    num_cores = 2 if _cdiv(rows_needed, tile_rows) >= 2 else 1
    blocks_per_core = _cdiv(rows_needed, tile_rows * num_cores)
    total_rows = num_cores * blocks_per_core * tile_rows
    n_padded = total_rows * _LANES

    def prep(x):
        x = x.reshape(B, -1)
        if n_padded > N:
            # Zero padding contributes exactly 0 to the BCE sum and dice partials
            # (p=0, t=0  =>  nll=0, p*t=0, p=0, t=0).
            x = jnp.pad(x, ((0, 0), (0, n_padded - N)))
        return x.reshape(B, total_rows, _LANES)

    tgt = prep(target)
    pred_tiles = [prep(p) for p in preds]

    in_spec = pl.BlockSpec(
        (B, tile_rows, _LANES),
        lambda c, r: (0, c * blocks_per_core + r, 0))

    out_shape = jax.ShapeDtypeStruct((num_cores, _N_ROWS, B, _LANES), jnp.float32)
    out_spec = pl.BlockSpec((1, _N_ROWS, B, _LANES), lambda c, r: (c, 0, 0, 0))

    total_elems = B * n_padded
    cost = pl.CostEstimate(
        flops=10 * 6 * total_elems,                    # mul/add/max per element per prediction
        transcendentals=2 * 6 * total_elems,           # two logs per element per prediction
        bytes_accessed=7 * total_elems * itemsize + num_cores * _N_ROWS * B * _LANES * 4,
    )

    acc = pl.pallas_call(
        _gt_bcedice_kernel,
        grid=(num_cores, blocks_per_core),
        in_specs=[in_spec] * 7,
        out_shape=out_shape,
        out_specs=out_spec,
        compiler_params=pltpu.CompilerParams(
            dimension_semantics=("parallel", "arbitrary"),
            vmem_limit_bytes=32 * 1024 * 1024,
        ),
        cost_estimate=cost,
    )(tgt, *pred_tiles)

    # Tiny epilogue (plain XLA): combine core/lane partials, finish BCE mean + dice.
    acc = jnp.sum(acc, axis=0)                                       # (14, B, 128)
    bce_total = -jnp.sum(acc[_ROW_BCE]) / jnp.float32(B * N)
    tsum_b = jnp.sum(acc[_ROW_TSUM], axis=-1)                        # (B,)
    inter_kb = jnp.sum(acc[_ROW_INTER:_ROW_INTER + 6], axis=-1)      # (6, B)
    psum_kb = jnp.sum(acc[_ROW_PSUM:_ROW_PSUM + 6], axis=-1)         # (6, B)
    dice_score = (2.0 * inter_kb + _SMOOTH) / (psum_kb + tsum_b[None, :] + _SMOOTH)
    dice_loss = 1.0 - jnp.mean(dice_score, axis=1)                   # (6,)
    w = jnp.asarray(_WEIGHTS, jnp.float32)
    return bce_total + jnp.sum(w * dice_loss)


def _reference(pre, out, target):
    """Plain-JAX reference mirroring the PyTorch module (sanity check)."""
    B = out.shape[0]

    def bcedice(p, t):
        p = p.reshape(B, -1).astype(jnp.float32)
        t = t.reshape(B, -1).astype(jnp.float32)
        lp = jnp.maximum(jnp.log(p), -100.0)
        l1p = jnp.maximum(jnp.log(1.0 - p), -100.0)
        bce = -jnp.mean(t * lp + (1.0 - t) * l1p)
        inter = jnp.sum(p * t, axis=1)
        dice = (2.0 * inter + _SMOOTH) / (jnp.sum(p, axis=1) + jnp.sum(t, axis=1) + _SMOOTH)
        return bce + (1.0 - jnp.mean(dice))

    preds = [out] + list(pre)
    return sum(w * bcedice(p, target) for w, p in zip(_WEIGHTS, preds))


if __name__ == "__main__":
    key = jax.random.PRNGKey(0)
    B, C, H, W = 2, 1, 16, 16  # NCHW, typical (small) segmentation output shapes

    keys = jax.random.split(key, 8)
    # Predictions are post-sigmoid probabilities (as expected by BCELoss).
    out = jax.nn.sigmoid(jax.random.normal(keys[0], (B, C, H, W), jnp.float32))
    pre = tuple(
        jax.nn.sigmoid(jax.random.normal(keys[1 + i], (B, C, H, W), jnp.float32))
        for i in range(5)
    )
    # Binary target in {0, 1}.
    target = (jax.random.uniform(keys[6], (B, C, H, W)) > 0.5).astype(jnp.float32)

    loss = gt_bce_dice_loss(pre, out, target)
    jax.block_until_ready(loss)

    ref = _reference(pre, out, target)
    assert jnp.allclose(loss, ref, rtol=1e-4, atol=1e-4), (loss, ref)

    print("KERNEL_OK")
</pallas_src>

<mosaic_0001>
module attributes {stable_mosaic.version = 11 : i64} {
  func.func @_gt_bcedice_kernel(%arg0: i32, %arg1: i32, %arg2: memref<2x8x128xf32, #tpu.memory_space<vmem>>, %arg3: memref<2x8x128xf32, #tpu.memory_space<vmem>>, %arg4: memref<2x8x128xf32, #tpu.memory_space<vmem>>, %arg5: memref<2x8x128xf32, #tpu.memory_space<vmem>>, %arg6: memref<2x8x128xf32, #tpu.memory_space<vmem>>, %arg7: memref<2x8x128xf32, #tpu.memory_space<vmem>>, %arg8: memref<2x8x128xf32, #tpu.memory_space<vmem>>, %arg9: memref<1x14x2x128xf32, #tpu.memory_space<vmem>>) attributes {dimension_semantics = [#tpu.dimension_semantics<parallel>, #tpu.dimension_semantics<arbitrary>], iteration_bounds = array<i64: 1, 1>, scalar_prefetch = 0 : i64, scratch_operands = 0 : i64, tpu.core_type = #tpu.core_type<tc>, window_params = [{transform_indices = @transform_0, window_bounds = array<i64: 2, 8, 128>}, {transform_indices = @transform_1, window_bounds = array<i64: 2, 8, 128>}, {transform_indices = @transform_2, window_bounds = array<i64: 2, 8, 128>}, {transform_indices = @transform_3, window_bounds = array<i64: 2, 8, 128>}, {transform_indices = @transform_4, window_bounds = array<i64: 2, 8, 128>}, {transform_indices = @transform_5, window_bounds = array<i64: 2, 8, 128>}, {transform_indices = @transform_6, window_bounds = array<i64: 2, 8, 128>}, {transform_indices = @transform_7, window_bounds = array<i64: 1, 14, 2, 128>}]} {
    %c0_i32 = arith.constant 0 : i32
    %0 = arith.cmpi eq, %arg1, %c0_i32 : i32
    %1 = arith.extui %0 : i1 to i32
    %c0_i32_0 = arith.constant 0 : i32
    %2 = arith.cmpi ne, %1, %c0_i32_0 : i32
    scf.if %2 {
      %cst_162 = arith.constant 0.000000e+00 : f32
      %202 = vector.broadcast %cst_162 : f32 to vector<1x14x2x128xf32>
      %c0_163 = arith.constant 0 : index
      %c0_164 = arith.constant 0 : index
      %c0_165 = arith.constant 0 : index
      %c0_166 = arith.constant 0 : index
      %203 = vector.load %arg9[%c0_163, %c0_164, %c0_165, %c0_166] : memref<1x14x2x128xf32, #tpu.memory_space<vmem>>, vector<1x14x2x128xf32>
      tpu.vector_store %arg9[%c0_163, %c0_164, %c0_165, %c0_166], %202 {strides = array<i32>} : memref<1x14x2x128xf32, #tpu.memory_space<vmem>>, vector<1x14x2x128xf32>,
    } else {
    }
    %c0 = arith.constant 0 : index
    %c0_1 = arith.constant 0 : index
    %c0_2 = arith.constant 0 : index
    %3 = vector.load %arg2[%c0, %c0_1, %c0_2] : memref<2x8x128xf32, #tpu.memory_space<vmem>>, vector<2x8x128xf32>
    %c0_3 = arith.constant 0 : index
    %c1 = arith.constant 1 : index
    %c0_4 = arith.constant 0 : index
    %c0_5 = arith.constant 0 : index
    %4 = vector.load %arg9[%c0_3, %c1, %c0_4, %c0_5] : memref<1x14x2x128xf32, #tpu.memory_space<vmem>>, vector<1x1x2x128xf32>
    %5 = vector.shape_cast %4 : vector<1x1x2x128xf32> to vector<2x128xf32>
    %cst = arith.constant dense<0.000000e+00> : vector<2x128xf32>
    %6 = vector.multi_reduction <add>, %3, %cst [1] : vector<2x8x128xf32> to vector<2x128xf32>
    %7 = arith.addf %5, %6 : vector<2x128xf32>
    %c0_6 = arith.constant 0 : index
    %c1_7 = arith.constant 1 : index
    %c0_8 = arith.constant 0 : index
    %c0_9 = arith.constant 0 : index
    %8 = vector.load %arg9[%c0_6, %c1_7, %c0_8, %c0_9] : memref<1x14x2x128xf32, #tpu.memory_space<vmem>>, vector<1x1x2x128xf32>
    %9 = vector.shape_cast %8 : vector<1x1x2x128xf32> to vector<2x128xf32>
    %10 = vector.shape_cast %7 : vector<2x128xf32> to vector<1x1x2x128xf32>
    tpu.vector_store %arg9[%c0_6, %c1_7, %c0_8, %c0_9], %10 {strides = array<i32>} : memref<1x14x2x128xf32, #tpu.memory_space<vmem>>, vector<1x1x2x128xf32>,
    %c0_10 = arith.constant 0 : index
    %c0_11 = arith.constant 0 : index
    %c0_12 = arith.constant 0 : index
    %c0_13 = arith.constant 0 : index
    %11 = vector.load %arg9[%c0_10, %c0_11, %c0_12, %c0_13] : memref<1x14x2x128xf32, #tpu.memory_space<vmem>>, vector<1x1x2x128xf32>
    %12 = vector.shape_cast %11 : vector<1x1x2x128xf32> to vector<2x128xf32>
    %c0_14 = arith.constant 0 : index
    %c0_15 = arith.constant 0 : index
    %c0_16 = arith.constant 0 : index
    %13 = vector.load %arg3[%c0_14, %c0_15, %c0_16] : memref<2x8x128xf32, #tpu.memory_space<vmem>>, vector<2x8x128xf32>
    %14 = math.log %13 : vector<2x8x128xf32>
    %cst_17 = arith.constant -1.000000e+02 : f32
    %15 = vector.broadcast %cst_17 : f32 to vector<2x8x128xf32>
    %16 = arith.maximumf %14, %15 : vector<2x8x128xf32>
    %cst_18 = arith.constant 1.000000e+00 : f32
    %17 = vector.broadcast %cst_18 : f32 to vector<2x8x128xf32>
    %18 = arith.subf %17, %13 : vector<2x8x128xf32>
    %19 = math.log %18 : vector<2x8x128xf32>
    %cst_19 = arith.constant -1.000000e+02 : f32
    %20 = vector.broadcast %cst_19 : f32 to vector<2x8x128xf32>
    %21 = arith.maximumf %19, %20 : vector<2x8x128xf32>
    %22 = arith.subf %16, %21 : vector<2x8x128xf32>
    %23 = arith.mulf %3, %22 : vector<2x8x128xf32>
    %24 = arith.addf %21, %23 : vector<2x8x128xf32>
    %cst_20 = arith.constant dense<0.000000e+00> : vector<2x128xf32>
    %25 = vector.multi_reduction <add>, %24, %cst_20 [1] : vector<2x8x128xf32> to vector<2x128xf32>
    %cst_21 = arith.constant 1.000000e+00 : f32
    %26 = vector.broadcast %cst_21 : f32 to vector<2x128xf32>
    %27 = arith.mulf %26, %25 : vector<2x128xf32>
    %28 = arith.addf %12, %27 : vector<2x128xf32>
    %c0_22 = arith.constant 0 : index
    %c2 = arith.constant 2 : index
    %c0_23 = arith.constant 0 : index
    %c0_24 = arith.constant 0 : index
    %29 = vector.load %arg9[%c0_22, %c2, %c0_23, %c0_24] : memref<1x14x2x128xf32, #tpu.memory_space<vmem>>, vector<1x1x2x128xf32>
    %30 = vector.shape_cast %29 : vector<1x1x2x128xf32> to vector<2x128xf32>
    %31 = arith.mulf %13, %3 : vector<2x8x128xf32>
    %cst_25 = arith.constant dense<0.000000e+00> : vector<2x128xf32>
    %32 = vector.multi_reduction <add>, %31, %cst_25 [1] : vector<2x8x128xf32> to vector<2x128xf32>
    %33 = arith.addf %30, %32 : vector<2x128xf32>
    %c0_26 = arith.constant 0 : index
    %c2_27 = arith.constant 2 : index
    %c0_28 = arith.constant 0 : index
    %c0_29 = arith.constant 0 : index
    %34 = vector.load %arg9[%c0_26, %c2_27, %c0_28, %c0_29] : memref<1x14x2x128xf32, #tpu.memory_space<vmem>>, vector<1x1x2x128xf32>
    %35 = vector.shape_cast %34 : vector<1x1x2x128xf32> to vector<2x128xf32>
    %36 = vector.shape_cast %33 : vector<2x128xf32> to vector<1x1x2x128xf32>
    tpu.vector_store %arg9[%c0_26, %c2_27, %c0_28, %c0_29], %36 {strides = array<i32>} : memref<1x14x2x128xf32, #tpu.memory_space<vmem>>, vector<1x1x2x128xf32>,
    %c0_30 = arith.constant 0 : index
    %c8 = arith.constant 8 : index
    %c0_31 = arith.constant 0 : index
    %c0_32 = arith.constant 0 : index
    %37 = vector.load %arg9[%c0_30, %c8, %c0_31, %c0_32] : memref<1x14x2x128xf32, #tpu.memory_space<vmem>>, vector<1x1x2x128xf32>
    %38 = vector.shape_cast %37 : vector<1x1x2x128xf32> to vector<2x128xf32>
    %cst_33 = arith.constant dense<0.000000e+00> : vector<2x128xf32>
    %39 = vector.multi_reduction <add>, %13, %cst_33 [1] : vector<2x8x128xf32> to vector<2x128xf32>
    %40 = arith.addf %38, %39 : vector<2x128xf32>
    %c0_34 = arith.constant 0 : index
    %c8_35 = arith.constant 8 : index
    %c0_36 = arith.constant 0 : index
    %c0_37 = arith.constant 0 : index
    %41 = vector.load %arg9[%c0_34, %c8_35, %c0_36, %c0_37] : memref<1x14x2x128xf32, #tpu.memory_space<vmem>>, vector<1x1x2x128xf32>
    %42 = vector.shape_cast %41 : vector<1x1x2x128xf32> to vector<2x128xf32>
    %43 = vector.shape_cast %40 : vector<2x128xf32> to vector<1x1x2x128xf32>
    tpu.vector_store %arg9[%c0_34, %c8_35, %c0_36, %c0_37], %43 {strides = array<i32>} : memref<1x14x2x128xf32, #tpu.memory_space<vmem>>, vector<1x1x2x128xf32>,
    %c0_38 = arith.constant 0 : index
    %c0_39 = arith.constant 0 : index
    %c0_40 = arith.constant 0 : index
    %44 = vector.load %arg4[%c0_38, %c0_39, %c0_40] : memref<2x8x128xf32, #tpu.memory_space<vmem>>, vector<2x8x128xf32>
    %45 = math.log %44 : vector<2x8x128xf32>
    %cst_41 = arith.constant -1.000000e+02 : f32
    %46 = vector.broadcast %cst_41 : f32 to vector<2x8x128xf32>
    %47 = arith.maximumf %45, %46 : vector<2x8x128xf32>
    %cst_42 = arith.constant 1.000000e+00 : f32
    %48 = vector.broadcast %cst_42 : f32 to vector<2x8x128xf32>
    %49 = arith.subf %48, %44 : vector<2x8x128xf32>
    %50 = math.log %49 : vector<2x8x128xf32>
    %cst_43 = arith.constant -1.000000e+02 : f32
    %51 = vector.broadcast %cst_43 : f32 to vector<2x8x128xf32>
    %52 = arith.maximumf %50, %51 : vector<2x8x128xf32>
    %53 = arith.subf %47, %52 : vector<2x8x128xf32>
    %54 = arith.mulf %3, %53 : vector<2x8x128xf32>
    %55 = arith.addf %52, %54 : vector<2x8x128xf32>
    %cst_44 = arith.constant dense<0.000000e+00> : vector<2x128xf32>
    %56 = vector.multi_reduction <add>, %55, %cst_44 [1] : vector<2x8x128xf32> to vector<2x128xf32>
    %cst_45 = arith.constant 1.000000e-01 : f32
    %57 = vector.broadcast %cst_45 : f32 to vector<2x128xf32>
    %58 = arith.mulf %57, %56 : vector<2x128xf32>
    %59 = arith.addf %28, %58 : vector<2x128xf32>
    %c0_46 = arith.constant 0 : index
    %c3 = arith.constant 3 : index
    %c0_47 = arith.constant 0 : index
    %c0_48 = arith.constant 0 : index
    %60 = vector.load %arg9[%c0_46, %c3, %c0_47, %c0_48] : memref<1x14x2x128xf32, #tpu.memory_space<vmem>>, vector<1x1x2x128xf32>
    %61 = vector.shape_cast %60 : vector<1x1x2x128xf32> to vector<2x128xf32>
    %62 = arith.mulf %44, %3 : vector<2x8x128xf32>
    %cst_49 = arith.constant dense<0.000000e+00> : vector<2x128xf32>
    %63 = vector.multi_reduction <add>, %62, %cst_49 [1] : vector<2x8x128xf32> to vector<2x128xf32>
    %64 = arith.addf %61, %63 : vector<2x128xf32>
    %c0_50 = arith.constant 0 : index
    %c3_51 = arith.constant 3 : index
    %c0_52 = arith.constant 0 : index
    %c0_53 = arith.constant 0 : index
    %65 = vector.load %arg9[%c0_50, %c3_51, %c0_52, %c0_53] : memref<1x14x2x128xf32, #tpu.memory_space<vmem>>, vector<1x1x2x128xf32>
    %66 = vector.shape_cast %65 : vector<1x1x2x128xf32> to vector<2x128xf32>
    %67 = vector.shape_cast %64 : vector<2x128xf32> to vector<1x1x2x128xf32>
    tpu.vector_store %arg9[%c0_50, %c3_51, %c0_52, %c0_53], %67 {strides = array<i32>} : memref<1x14x2x128xf32, #tpu.memory_space<vmem>>, vector<1x1x2x128xf32>,
    %c0_54 = arith.constant 0 : index
    %c9 = arith.constant 9 : index
    %c0_55 = arith.constant 0 : index
    %c0_56 = arith.constant 0 : index
    %68 = vector.load %arg9[%c0_54, %c9, %c0_55, %c0_56] : memref<1x14x2x128xf32, #tpu.memory_space<vmem>>, vector<1x1x2x128xf32>
    %69 = vector.shape_cast %68 : vector<1x1x2x128xf32> to vector<2x128xf32>
    %cst_57 = arith.constant dense<0.000000e+00> : vector<2x128xf32>
    %70 = vector.multi_reduction <add>, %44, %cst_57 [1] : vector<2x8x128xf32> to vector<2x128xf32>
    %71 = arith.addf %69, %70 : vector<2x128xf32>
    %c0_58 = arith.constant 0 : index
    %c9_59 = arith.constant 9 : index
    %c0_60 = arith.constant 0 : index
    %c0_61 = arith.constant 0 : index
    %72 = vector.load %arg9[%c0_58, %c9_59, %c0_60, %c0_61] : memref<1x14x2x128xf32, #tpu.memory_space<vmem>>, vector<1x1x2x128xf32>
    %73 = vector.shape_cast %72 : vector<1x1x2x128xf32> to vector<2x128xf32>
    %74 = vector.shape_cast %71 : vector<2x128xf32> to vector<1x1x2x128xf32>
    tpu.vector_store %arg9[%c0_58, %c9_59, %c0_60, %c0_61], %74 {strides = array<i32>} : memref<1x14x2x128xf32, #tpu.memory_space<vmem>>, vector<1x1x2x128xf32>,
    %c0_62 = arith.constant 0 : index
    %c0_63 = arith.constant 0 : index
    %c0_64 = arith.constant 0 : index
    %75 = vector.load %arg5[%c0_62, %c0_63, %c0_64] : memref<2x8x128xf32, #tpu.memory_space<vmem>>, vector<2x8x128xf32>
    %76 = math.log %75 : vector<2x8x128xf32>
    %cst_65 = arith.constant -1.000000e+02 : f32
    %77 = vector.broadcast %cst_65 : f32 to vector<2x8x128xf32>
    %78 = arith.maximumf %76, %77 : vector<2x8x128xf32>
    %cst_66 = arith.constant 1.000000e+00 : f32
    %79 = vector.broadcast %cst_66 : f32 to vector<2x8x128xf32>
    %80 = arith.subf %79, %75 : vector<2x8x128xf32>
    %81 = math.log %80 : vector<2x8x128xf32>
    %cst_67 = arith.constant -1.000000e+02 : f32
    %82 = vector.broadcast %cst_67 : f32 to vector<2x8x128xf32>
    %83 = arith.maximumf %81, %82 : vector<2x8x128xf32>
    %84 = arith.subf %78, %83 : vector<2x8x128xf32>
    %85 = arith.mulf %3, %84 : vector<2x8x128xf32>
    %86 = arith.addf %83, %85 : vector<2x8x128xf32>
    %cst_68 = arith.constant dense<0.000000e+00> : vector<2x128xf32>
    %87 = vector.multi_reduction <add>, %86, %cst_68 [1] : vector<2x8x128xf32> to vector<2x128xf32>
    %cst_69 = arith.constant 2.000000e-01 : f32
    %88 = vector.broadcast %cst_69 : f32 to vector<2x128xf32>
    %89 = arith.mulf %88, %87 : vector<2x128xf32>
    %90 = arith.addf %59, %89 : vector<2x128xf32>
    %c0_70 = arith.constant 0 : index
    %c4 = arith.constant 4 : index
    %c0_71 = arith.constant 0 : index
    %c0_72 = arith.constant 0 : index
    %91 = vector.load %arg9[%c0_70, %c4, %c0_71, %c0_72] : memref<1x14x2x128xf32, #tpu.memory_space<vmem>>, vector<1x1x2x128xf32>
    %92 = vector.shape_cast %91 : vector<1x1x2x128xf32> to vector<2x128xf32>
    %93 = arith.mulf %75, %3 : vector<2x8x128xf32>
    %cst_73 = arith.constant dense<0.000000e+00> : vector<2x128xf32>
    %94 = vector.multi_reduction <add>, %93, %cst_73 [1] : vector<2x8x128xf32> to vector<2x128xf32>
    %95 = arith.addf %92, %94 : vector<2x128xf32>
    %c0_74 = arith.constant 0 : index
    %c4_75 = arith.constant 4 : index
    %c0_76 = arith.constant 0 : index
    %c0_77 = arith.constant 0 : index
    %96 = vector.load %arg9[%c0_74, %c4_75, %c0_76, %c0_77] : memref<1x14x2x128xf32, #tpu.memory_space<vmem>>, vector<1x1x2x128xf32>
    %97 = vector.shape_cast %96 : vector<1x1x2x128xf32> to vector<2x128xf32>
    %98 = vector.shape_cast %95 : vector<2x128xf32> to vector<1x1x2x128xf32>
    tpu.vector_store %arg9[%c0_74, %c4_75, %c0_76, %c0_77], %98 {strides = array<i32>} : memref<1x14x2x128xf32, #tpu.memory_space<vmem>>, vector<1x1x2x128xf32>,
    %c0_78 = arith.constant 0 : index
    %c10 = arith.constant 10 : index
    %c0_79 = arith.constant 0 : index
    %c0_80 = arith.constant 0 : index
    %99 = vector.load %arg9[%c0_78, %c10, %c0_79, %c0_80] : memref<1x14x2x128xf32, #tpu.memory_space<vmem>>, vector<1x1x2x128xf32>
    %100 = vector.shape_cast %99 : vector<1x1x2x128xf32> to vector<2x128xf32>
    %cst_81 = arith.constant dense<0.000000e+00> : vector<2x128xf32>
    %101 = vector.multi_reduction <add>, %75, %cst_81 [1] : vector<2x8x128xf32> to vector<2x128xf32>
    %102 = arith.addf %100, %101 : vector<2x128xf32>
    %c0_82 = arith.constant 0 : index
    %c10_83 = arith.constant 10 : index
    %c0_84 = arith.constant 0 : index
    %c0_85 = arith.constant 0 : index
    %103 = vector.load %arg9[%c0_82, %c10_83, %c0_84, %c0_85] : memref<1x14x2x128xf32, #tpu.memory_space<vmem>>, vector<1x1x2x128xf32>
    %104 = vector.shape_cast %103 : vector<1x1x2x128xf32> to vector<2x128xf32>
    %105 = vector.shape_cast %102 : vector<2x128xf32> to vector<1x1x2x128xf32>
    tpu.vector_store %arg9[%c0_82, %c10_83, %c0_84, %c0_85], %105 {strides = array<i32>} : memref<1x14x2x128xf32, #tpu.memory_space<vmem>>, vector<1x1x2x128xf32>,
    %c0_86 = arith.constant 0 : index
    %c0_87 = arith.constant 0 : index
    %c0_88 = arith.constant 0 : index
    %106 = vector.load %arg6[%c0_86, %c0_87, %c0_88] : memref<2x8x128xf32, #tpu.memory_space<vmem>>, vector<2x8x128xf32>
    %107 = math.log %106 : vector<2x8x128xf32>
    %cst_89 = arith.constant -1.000000e+02 : f32
    %108 = vector.broadcast %cst_89 : f32 to vector<2x8x128xf32>
    %109 = arith.maximumf %107, %108 : vector<2x8x128xf32>
    %cst_90 = arith.constant 1.000000e+00 : f32
    %110 = vector.broadcast %cst_90 : f32 to vector<2x8x128xf32>
    %111 = arith.subf %110, %106 : vector<2x8x128xf32>
    %112 = math.log %111 : vector<2x8x128xf32>
    %cst_91 = arith.constant -1.000000e+02 : f32
    %113 = vector.broadcast %cst_91 : f32 to vector<2x8x128xf32>
    %114 = arith.maximumf %112, %113 : vector<2x8x128xf32>
    %115 = arith.subf %109, %114 : vector<2x8x128xf32>
    %116 = arith.mulf %3, %115 : vector<2x8x128xf32>
    %117 = arith.addf %114, %116 : vector<2x8x128xf32>
    %cst_92 = arith.constant dense<0.000000e+00> : vector<2x128xf32>
    %118 = vector.multi_reduction <add>, %117, %cst_92 [1] : vector<2x8x128xf32> to vector<2x128xf32>
    %cst_93 = arith.constant 3.000000e-01 : f32
    %119 = vector.broadcast %cst_93 : f32 to vector<2x128xf32>
    %120 = arith.mulf %119, %118 : vector<2x128xf32>
    %121 = arith.addf %90, %120 : vector<2x128xf32>
    %c0_94 = arith.constant 0 : index
    %c5 = arith.constant 5 : index
    %c0_95 = arith.constant 0 : index
    %c0_96 = arith.constant 0 : index
    %122 = vector.load %arg9[%c0_94, %c5, %c0_95, %c0_96] : memref<1x14x2x128xf32, #tpu.memory_space<vmem>>, vector<1x1x2x128xf32>
    %123 = vector.shape_cast %122 : vector<1x1x2x128xf32> to vector<2x128xf32>
    %124 = arith.mulf %106, %3 : vector<2x8x128xf32>
    %cst_97 = arith.constant dense<0.000000e+00> : vector<2x128xf32>
    %125 = vector.multi_reduction <add>, %124, %cst_97 [1] : vector<2x8x128xf32> to vector<2x128xf32>
    %126 = arith.addf %123, %125 : vector<2x128xf32>
    %c0_98 = arith.constant 0 : index
    %c5_99 = arith.constant 5 : index
    %c0_100 = arith.constant 0 : index
    %c0_101 = arith.constant 0 : index
    %127 = vector.load %arg9[%c0_98, %c5_99, %c0_100, %c0_101] : memref<1x14x2x128xf32, #tpu.memory_space<vmem>>, vector<1x1x2x128xf32>
    %128 = vector.shape_cast %127 : vector<1x1x2x128xf32> to vector<2x128xf32>
    %129 = vector.shape_cast %126 : vector<2x128xf32> to vector<1x1x2x128xf32>
    tpu.vector_store %arg9[%c0_98, %c5_99, %c0_100, %c0_101], %129 {strides = array<i32>} : memref<1x14x2x128xf32, #tpu.memory_space<vmem>>, vector<1x1x2x128xf32>,
    %c0_102 = arith.constant 0 : index
    %c11 = arith.constant 11 : index
    %c0_103 = arith.constant 0 : index
    %c0_104 = arith.constant 0 : index
    %130 = vector.load %arg9[%c0_102, %c11, %c0_103, %c0_104] : memref<1x14x2x128xf32, #tpu.memory_space<vmem>>, vector<1x1x2x128xf32>
    %131 = vector.shape_cast %130 : vector<1x1x2x128xf32> to vector<2x128xf32>
    %cst_105 = arith.constant dense<0.000000e+00> : vector<2x128xf32>
    %132 = vector.multi_reduction <add>, %106, %cst_105 [1] : vector<2x8x128xf32> to vector<2x128xf32>
    %133 = arith.addf %131, %132 : vector<2x128xf32>
    %c0_106 = arith.constant 0 : index
    %c11_107 = arith.constant 11 : index
    %c0_108 = arith.constant 0 : index
    %c0_109 = arith.constant 0 : index
    %134 = vector.load %arg9[%c0_106, %c11_107, %c0_108, %c0_109] : memref<1x14x2x128xf32, #tpu.memory_space<vmem>>, vector<1x1x2x128xf32>
    %135 = vector.shape_cast %134 : vector<1x1x2x128xf32> to vector<2x128xf32>
    %136 = vector.shape_cast %133 : vector<2x128xf32> to vector<1x1x2x128xf32>
    tpu.vector_store %arg9[%c0_106, %c11_107, %c0_108, %c0_109], %136 {strides = array<i32>} : memref<1x14x2x128xf32, #tpu.memory_space<vmem>>, vector<1x1x2x128xf32>,
    %c0_110 = arith.constant 0 : index
    %c0_111 = arith.constant 0 : index
    %c0_112 = arith.constant 0 : index
    %137 = vector.load %arg7[%c0_110, %c0_111, %c0_112] : memref<2x8x128xf32, #tpu.memory_space<vmem>>, vector<2x8x128xf32>
    %138 = math.log %137 : vector<2x8x128xf32>
    %cst_113 = arith.constant -1.000000e+02 : f32
    %139 = vector.broadcast %cst_113 : f32 to vector<2x8x128xf32>
    %140 = arith.maximumf %138, %139 : vector<2x8x128xf32>
    %cst_114 = arith.constant 1.000000e+00 : f32
    %141 = vector.broadcast %cst_114 : f32 to vector<2x8x128xf32>
    %142 = arith.subf %141, %137 : vector<2x8x128xf32>
    %143 = math.log %142 : vector<2x8x128xf32>
    %cst_115 = arith.constant -1.000000e+02 : f32
    %144 = vector.broadcast %cst_115 : f32 to vector<2x8x128xf32>
    %145 = arith.maximumf %143, %144 : vector<2x8x128xf32>
    %146 = arith.subf %140, %145 : vector<2x8x128xf32>
    %147 = arith.mulf %3, %146 : vector<2x8x128xf32>
    %148 = arith.addf %145, %147 : vector<2x8x128xf32>
    %cst_116 = arith.constant dense<0.000000e+00> : vector<2x128xf32>
    %149 = vector.multi_reduction <add>, %148, %cst_116 [1] : vector<2x8x128xf32> to vector<2x128xf32>
    %cst_117 = arith.constant 4.000000e-01 : f32
    %150 = vector.broadcast %cst_117 : f32 to vector<2x128xf32>
    %151 = arith.mulf %150, %149 : vector<2x128xf32>
    %152 = arith.addf %121, %151 : vector<2x128xf32>
    %c0_118 = arith.constant 0 : index
    %c6 = arith.constant 6 : index
    %c0_119 = arith.constant 0 : index
    %c0_120 = arith.constant 0 : index
    %153 = vector.load %arg9[%c0_118, %c6, %c0_119, %c0_120] : memref<1x14x2x128xf32, #tpu.memory_space<vmem>>, vector<1x1x2x128xf32>
    %154 = vector.shape_cast %153 : vector<1x1x2x128xf32> to vector<2x128xf32>
    %155 = arith.mulf %137, %3 : vector<2x8x128xf32>
    %cst_121 = arith.constant dense<0.000000e+00> : vector<2x128xf32>
    %156 = vector.multi_reduction <add>, %155, %cst_121 [1] : vector<2x8x128xf32> to vector<2x128xf32>
    %157 = arith.addf %154, %156 : vector<2x128xf32>
    %c0_122 = arith.constant 0 : index
    %c6_123 = arith.constant 6 : index
    %c0_124 = arith.constant 0 : index
    %c0_125 = arith.constant 0 : index
    %158 = vector.load %arg9[%c0_122, %c6_123, %c0_124, %c0_125] : memref<1x14x2x128xf32, #tpu.memory_space<vmem>>, vector<1x1x2x128xf32>
    %159 = vector.shape_cast %158 : vector<1x1x2x128xf32> to vector<2x128xf32>
    %160 = vector.shape_cast %157 : vector<2x128xf32> to vector<1x1x2x128xf32>
    tpu.vector_store %arg9[%c0_122, %c6_123, %c0_124, %c0_125], %160 {strides = array<i32>} : memref<1x14x2x128xf32, #tpu.memory_space<vmem>>, vector<1x1x2x128xf32>,
    %c0_126 = arith.constant 0 : index
    %c12 = arith.constant 12 : index
    %c0_127 = arith.constant 0 : index
    %c0_128 = arith.constant 0 : index
    %161 = vector.load %arg9[%c0_126, %c12, %c0_127, %c0_128] : memref<1x14x2x128xf32, #tpu.memory_space<vmem>>, vector<1x1x2x128xf32>
    %162 = vector.shape_cast %161 : vector<1x1x2x128xf32> to vector<2x128xf32>
    %cst_129 = arith.constant dense<0.000000e+00> : vector<2x128xf32>
    %163 = vector.multi_reduction <add>, %137, %cst_129 [1] : vector<2x8x128xf32> to vector<2x128xf32>
    %164 = arith.addf %162, %163 : vector<2x128xf32>
    %c0_130 = arith.constant 0 : index
    %c12_131 = arith.constant 12 : index
    %c0_132 = arith.constant 0 : index
    %c0_133 = arith.constant 0 : index
    %165 = vector.load %arg9[%c0_130, %c12_131, %c0_132, %c0_133] : memref<1x14x2x128xf32, #tpu.memory_space<vmem>>, vector<1x1x2x128xf32>
    %166 = vector.shape_cast %165 : vector<1x1x2x128xf32> to vector<2x128xf32>
    %167 = vector.shape_cast %164 : vector<2x128xf32> to vector<1x1x2x128xf32>
    tpu.vector_store %arg9[%c0_130, %c12_131, %c0_132, %c0_133], %167 {strides = array<i32>} : memref<1x14x2x128xf32, #tpu.memory_space<vmem>>, vector<1x1x2x128xf32>,
    %c0_134 = arith.constant 0 : index
    %c0_135 = arith.constant 0 : index
    %c0_136 = arith.constant 0 : index
    %168 = vector.load %arg8[%c0_134, %c0_135, %c0_136] : memref<2x8x128xf32, #tpu.memory_space<vmem>>, vector<2x8x128xf32>
    %169 = math.log %168 : vector<2x8x128xf32>
    %cst_137 = arith.constant -1.000000e+02 : f32
    %170 = vector.broadcast %cst_137 : f32 to vector<2x8x128xf32>
    %171 = arith.maximumf %169, %170 : vector<2x8x128xf32>
    %cst_138 = arith.constant 1.000000e+00 : f32
    %172 = vector.broadcast %cst_138 : f32 to vector<2x8x128xf32>
    %173 = arith.subf %172, %168 : vector<2x8x128xf32>
    %174 = math.log %173 : vector<2x8x128xf32>
    %cst_139 = arith.constant -1.000000e+02 : f32
    %175 = vector.broadcast %cst_139 : f32 to vector<2x8x128xf32>
    %176 = arith.maximumf %174, %175 : vector<2x8x128xf32>
    %177 = arith.subf %171, %176 : vector<2x8x128xf32>
    %178 = arith.mulf %3, %177 : vector<2x8x128xf32>
    %179 = arith.addf %176, %178 : vector<2x8x128xf32>
    %cst_140 = arith.constant dense<0.000000e+00> : vector<2x128xf32>
    %180 = vector.multi_reduction <add>, %179, %cst_140 [1] : vector<2x8x128xf32> to vector<2x128xf32>
    %cst_141 = arith.constant 5.000000e-01 : f32
    %181 = vector.broadcast %cst_141 : f32 to vector<2x128xf32>
    %182 = arith.mulf %181, %180 : vector<2x128xf32>
    %183 = arith.addf %152, %182 : vector<2x128xf32>
    %c0_142 = arith.constant 0 : index
    %c7 = arith.constant 7 : index
    %c0_143 = arith.constant 0 : index
    %c0_144 = arith.constant 0 : index
    %184 = vector.load %arg9[%c0_142, %c7, %c0_143, %c0_144] : memref<1x14x2x128xf32, #tpu.memory_space<vmem>>, vector<1x1x2x128xf32>
    %185 = vector.shape_cast %184 : vector<1x1x2x128xf32> to vector<2x128xf32>
    %186 = arith.mulf %168, %3 : vector<2x8x128xf32>
    %cst_145 = arith.constant dense<0.000000e+00> : vector<2x128xf32>
    %187 = vector.multi_reduction <add>, %186, %cst_145 [1] : vector<2x8x128xf32> to vector<2x128xf32>
    %188 = arith.addf %185, %187 : vector<2x128xf32>
    %c0_146 = arith.constant 0 : index
    %c7_147 = arith.constant 7 : index
    %c0_148 = arith.constant 0 : index
    %c0_149 = arith.constant 0 : index
    %189 = vector.load %arg9[%c0_146, %c7_147, %c0_148, %c0_149] : memref<1x14x2x128xf32, #tpu.memory_space<vmem>>, vector<1x1x2x128xf32>
    %190 = vector.shape_cast %189 : vector<1x1x2x128xf32> to vector<2x128xf32>
    %191 = vector.shape_cast %188 : vector<2x128xf32> to vector<1x1x2x128xf32>
    tpu.vector_store %arg9[%c0_146, %c7_147, %c0_148, %c0_149], %191 {strides = array<i32>} : memref<1x14x2x128xf32, #tpu.memory_space<vmem>>, vector<1x1x2x128xf32>,
    %c0_150 = arith.constant 0 : index
    %c13 = arith.constant 13 : index
    %c0_151 = arith.constant 0 : index
    %c0_152 = arith.constant 0 : index
    %192 = vector.load %arg9[%c0_150, %c13, %c0_151, %c0_152] : memref<1x14x2x128xf32, #tpu.memory_space<vmem>>, vector<1x1x2x128xf32>
    %193 = vector.shape_cast %192 : vector<1x1x2x128xf32> to vector<2x128xf32>
    %cst_153 = arith.constant dense<0.000000e+00> : vector<2x128xf32>
    %194 = vector.multi_reduction <add>, %168, %cst_153 [1] : vector<2x8x128xf32> to vector<2x128xf32>
    %195 = arith.addf %193, %194 : vector<2x128xf32>
    %c0_154 = arith.constant 0 : index
    %c13_155 = arith.constant 13 : index
    %c0_156 = arith.constant 0 : index
    %c0_157 = arith.constant 0 : index
    %196 = vector.load %arg9[%c0_154, %c13_155, %c0_156, %c0_157] : memref<1x14x2x128xf32, #tpu.memory_space<vmem>>, vector<1x1x2x128xf32>
    %197 = vector.shape_cast %196 : vector<1x1x2x128xf32> to vector<2x128xf32>
    %198 = vector.shape_cast %195 : vector<2x128xf32> to vector<1x1x2x128xf32>
    tpu.vector_store %arg9[%c0_154, %c13_155, %c0_156, %c0_157], %198 {strides = array<i32>} : memref<1x14x2x128xf32, #tpu.memory_space<vmem>>, vector<1x1x2x128xf32>,
    %c0_158 = arith.constant 0 : index
    %c0_159 = arith.constant 0 : index
    %c0_160 = arith.constant 0 : index
    %c0_161 = arith.constant 0 : index
    %199 = vector.load %arg9[%c0_158, %c0_159, %c0_160, %c0_161] : memref<1x14x2x128xf32, #tpu.memory_space<vmem>>, vector<1x1x2x128xf32>
    %200 = vector.shape_cast %199 : vector<1x1x2x128xf32> to vector<2x128xf32>
    %201 = vector.shape_cast %183 : vector<2x128xf32> to vector<1x1x2x128xf32>
    tpu.vector_store %arg9[%c0_158, %c0_159, %c0_160, %c0_161], %201 {strides = array<i32>} : memref<1x14x2x128xf32, #tpu.memory_space<vmem>>, vector<1x1x2x128xf32>,
    return
  }
  func.func @transform_0(%arg0: i32, %arg1: i32) -> (i32, i32, i32) {
    %c1_i32 = arith.constant 1 : i32
    %0 = arith.muli %arg0, %c1_i32 : i32
    %1 = arith.addi %0, %arg1 : i32
    %c0_i32 = arith.constant 0 : i32
    %c0_i32_0 = arith.constant 0 : i32
    %c0_i32_1 = arith.constant 0 : i32
    return %c0_i32, %1, %c0_i32_0 : i32, i32, i32
  }
  func.func @transform_1(%arg0: i32, %arg1: i32) -> (i32, i32, i32) {
    %c1_i32 = arith.constant 1 : i32
    %0 = arith.muli %arg0, %c1_i32 : i32
    %1 = arith.addi %0, %arg1 : i32
    %c0_i32 = arith.constant 0 : i32
    %c0_i32_0 = arith.constant 0 : i32
    %c0_i32_1 = arith.constant 0 : i32
    return %c0_i32, %1, %c0_i32_0 : i32, i32, i32
  }
  func.func @transform_2(%arg0: i32, %arg1: i32) -> (i32, i32, i32) {
    %c1_i32 = arith.constant 1 : i32
    %0 = arith.muli %arg0, %c1_i32 : i32
    %1 = arith.addi %0, %arg1 : i32
    %c0_i32 = arith.constant 0 : i32
    %c0_i32_0 = arith.constant 0 : i32
    %c0_i32_1 = arith.constant 0 : i32
    return %c0_i32, %1, %c0_i32_0 : i32, i32, i32
  }
  func.func @transform_3(%arg0: i32, %arg1: i32) -> (i32, i32, i32) {
    %c1_i32 = arith.constant 1 : i32
    %0 = arith.muli %arg0, %c1_i32 : i32
    %1 = arith.addi %0, %arg1 : i32
    %c0_i32 = arith.constant 0 : i32
    %c0_i32_0 = arith.constant 0 : i32
    %c0_i32_1 = arith.constant 0 : i32
    return %c0_i32, %1, %c0_i32_0 : i32, i32, i32
  }
  func.func @transform_4(%arg0: i32, %arg1: i32) -> (i32, i32, i32) {
    %c1_i32 = arith.constant 1 : i32
    %0 = arith.muli %arg0, %c1_i32 : i32
    %1 = arith.addi %0, %arg1 : i32
    %c0_i32 = arith.constant 0 : i32
    %c0_i32_0 = arith.constant 0 : i32
    %c0_i32_1 = arith.constant 0 : i32
    return %c0_i32, %1, %c0_i32_0 : i32, i32, i32
  }
  func.func @transform_5(%arg0: i32, %arg1: i32) -> (i32, i32, i32) {
    %c1_i32 = arith.constant 1 : i32
    %0 = arith.muli %arg0, %c1_i32 : i32
    %1 = arith.addi %0, %arg1 : i32
    %c0_i32 = arith.constant 0 : i32
    %c0_i32_0 = arith.constant 0 : i32
    %c0_i32_1 = arith.constant 0 : i32
    return %c0_i32, %1, %c0_i32_0 : i32, i32, i32
  }
  func.func @transform_6(%arg0: i32, %arg1: i32) -> (i32, i32, i32) {
    %c1_i32 = arith.constant 1 : i32
    %0 = arith.muli %arg0, %c1_i32 : i32
    %1 = arith.addi %0, %arg1 : i32
    %c0_i32 = arith.constant 0 : i32
    %c0_i32_0 = arith.constant 0 : i32
    %c0_i32_1 = arith.constant 0 : i32
    return %c0_i32, %1, %c0_i32_0 : i32, i32, i32
  }
  func.func @transform_7(%arg0: i32, %arg1: i32) -> (i32, i32, i32, i32) {
    %c0_i32 = arith.constant 0 : i32
    %c0_i32_0 = arith.constant 0 : i32
    %c0_i32_1 = arith.constant 0 : i32
    %c0_i32_2 = arith.constant 0 : i32
    return %arg0, %c0_i32, %c0_i32_0, %c0_i32_1 : i32, i32, i32, i32
  }
}

</mosaic_0001>

<bundles_post_ra>
// kernel: tpu_custom_call.1
= control target key start
LH: loop header
LB: loop body
LE: loop exit
PB: predicated region body
PF: predicated region fallthrough
CT: control target
= control target key end

     0   :  { %12 = vsyncpa [#allocation3], 0  ;;  %s1271_s0 = inlined_call_operand.hbm [shape: f32[2,8,128], index: 0, kind: input, shape index: {}]   ;;  %s1272_s1 = inlined_call_operand.hbm [shape: f32[2,8,128], index: 1, kind: input, shape index: {}]   ;;  %s1273_s2 = inlined_call_operand.hbm [shape: f32[2,8,128], index: 2, kind: input, shape index: {}]   ;;  %s1274_s3 = inlined_call_operand.hbm [shape: f32[2,8,128], index: 3, kind: input, shape index: {}]   ;;  %s1275_s4 = inlined_call_operand.hbm [shape: f32[2,8,128], index: 4, kind: input, shape index: {}]   ;;  %s1276_s5 = inlined_call_operand.hbm [shape: f32[2,8,128], index: 5, kind: input, shape index: {}]   ;;  %s1277_s6 = inlined_call_operand.hbm [shape: f32[2,8,128], index: 6, kind: input, shape index: {}]   ;;  %s1278_s7 = inlined_call_operand.hbm [shape: f32[1,14,2,128], index: 7, kind: output, shape index: {}]  }
   0x1   :  { %13 = vsyncpa [#allocation6], 0 }
   0x2   :  { %14 = vsyncpa [#allocation9], 0 }
   0x3   :  { %15 = vsyncpa [#allocation12], 0 }
   0x4   :  { %16 = vsyncpa [#allocation4], 0  ;;  %s40_s26 = sshll.u32 %s1272_s1, 4  ;;  %s988_s27 = smov [#allocation5]   ;;  %s41_s26 = int_to_ptr.hbm [resolvable:$true] %s40_s26 }
   0x5   :  { %s42_s28 = sshll.u32 %s988_s27, 4  ;;  %s72_s8 = sshll.u32 %s1274_s3, 4  ;;  %s43_s28 = int_to_ptr.vmem [resolvable:$true] %s42_s28  ;;  %s73_s8 = int_to_ptr.hbm [resolvable:$true] %s72_s8 }
   0x6   :  { %s989_s9 = smov 128   ;;  %s990_s10 = smov 8  }
   0x7   :  { %48 = dma.hbm_to_vmem [thread:$0]  %s41_s26, 256, %s43_s28, [#allocation6], %s989_s9, %s989_s9, %s990_s10  }
   0x8   :  { %s991_s11 = smov [#allocation8]   ;;  %s104_s1 = sshll.u32 %s1276_s5, 4  ;;  %s105_s1 = int_to_ptr.hbm [resolvable:$true] %s104_s1 }
   0x9   :  { %s74_s12 = sshll.u32 %s991_s11, 4  ;;  %s24_s16 = sshll.u32 %s1271_s0, 4  ;;  %s75_s12 = int_to_ptr.vmem [resolvable:$true] %s74_s12  ;;  %s25_s16 = int_to_ptr.hbm [resolvable:$true] %s24_s16 }
   0xa   :  { %80 = dma.hbm_to_vmem [thread:$0]  %s73_s8, 256, %s75_s12, [#allocation9], %s989_s9, %s989_s9, %s990_s10  }
   0xb   :  { %s992_s17 = smov [#allocation11]   ;;  %s993_s19 = smov [#allocation2]  }
   0xc   :  { %s106_s18 = sshll.u32 %s992_s17, 4  ;;  %s26_s5 = sshll.u32 %s993_s19, 4  ;;  %s107_s18 = int_to_ptr.vmem [resolvable:$true] %s106_s18  ;;  %s27_s5 = int_to_ptr.vmem [resolvable:$true] %s26_s5 }
   0xd   :  { %112 = dma.hbm_to_vmem [thread:$0]  %s105_s1, 256, %s107_s18, [#allocation12], %s989_s9, %s989_s9, %s990_s10  }
   0xe   :  { %s56_s22 = sshll.u32 %s1273_s2, 4  ;;  %s88_s24 = sshll.u32 %s1275_s4, 4  ;;  %s57_s22 = int_to_ptr.hbm [resolvable:$true] %s56_s22  ;;  %s89_s24 = int_to_ptr.hbm [resolvable:$true] %s88_s24 }
   0xf   :  { %32 = dma.hbm_to_vmem [thread:$0]  %s25_s16, 256, %s27_s5, [#allocation3], %s989_s9, %s989_s9, %s990_s10  }
  0x10   :  { %s994_s25 = smov [#allocation7]   ;;  %s995_s27 = smov [#allocation10]  }
  0x11   :  { %s58_s26 = sshll.u32 %s994_s25, 4  ;;  %s90_s2 = sshll.u32 %s995_s27, 4  ;;  %s59_s26 = int_to_ptr.vmem [resolvable:$true] %s58_s26  ;;  %s91_s2 = int_to_ptr.vmem [resolvable:$true] %s90_s2 }
  0x12   :  { %64 = dma.hbm_to_vmem [thread:$0]  %s57_s22, 256, %s59_s26, [#allocation6], %s989_s9, %s989_s9, %s990_s10  }
  0x13   :  { %s120_s30 = sshll.u32 %s1277_s6, 4  ;;  %s996_s4 = smov [#allocation13]   ;;  %s121_s30 = int_to_ptr.hbm [resolvable:$true] %s120_s30 }
  0x14   :  { %96 = dma.hbm_to_vmem [thread:$0]  %s89_s24, 256, %s91_s2, [#allocation9], %s989_s9, %s989_s9, %s990_s10  }
  0x15   :  { %s122_s8 = sshll.u32 %s996_s4, 4  ;;  %s123_s8 = int_to_ptr.vmem [resolvable:$true] %s122_s8 }
  0x16   :  { %128 = dma.hbm_to_vmem [thread:$0]  %s121_s30, 256, %s123_s8, [#allocation12], %s989_s9, %s989_s9, %s990_s10  }
  0x17   :  { %978 = dma.done.wait [#allocation3], 256  }
  0x18   :  { %979 = vsyncadd [#allocation3], 4294967040 }
  0x19   :  { %980 = dma.done.wait [#allocation6], 512  }
  0x1a   :  { %981 = vsyncadd [#allocation6], 4294966784 }
  0x1b   :  { %982 = dma.done.wait [#allocation9], 512  }
  0x1c   :  { %983 = vsyncadd [#allocation9], 4294966784 }
  0x1d   :  { %984 = dma.done.wait [#allocation12], 512  }
  0x1e   :  { %985 = vsyncadd [#allocation12], 4294966784  ;;  %v997_v0 = vmov 0.0   ;;  %v1083_v1 = vld [vmem:[#allocation2] sm:$0xff]  ;;  %v1085_v2 = vld [vmem:[#allocation2 + $0x8] sm:$0xff]  ;;  %vm200_vm0 = vcmask 1041409  }
  0x1f   :  { %168 = vst [vmem:[#allocation14] sm:$0x3] %v997_v0  ;;  %v1087_v3 = vld [vmem:[#allocation5] sm:$0xff]  ;;  %v186_v4 = vrot.slane %v1083_v1, 4  ;;  %v192_v5 = vrot.slane %v1085_v2, 4  ;;  %v1091_v6 = vld [vmem:[#allocation5 + $0x8] sm:$0xff] }
  0x20   :  { %169 = vst [vmem:[#allocation14 + $0x2] sm:$0x3] %v997_v0  ;;  %v247_v7 = vmul.f32 %v1087_v3, %v1083_v1  ;;  %v269_v8 = vrot.slane %v1087_v3, 4  ;;  %v248_v9 = vmul.f32 %v1091_v6, %v1085_v2  ;;  %v275_v10 = vrot.slane %v1091_v6, 4  ;;  %v1102_v15 = vld [vmem:[#allocation7] sm:$0xff]  ;;  %v1104_v16 = vld [vmem:[#allocation7 + $0x8] sm:$0xff] }
  0x21   :  { %170 = vst [vmem:[#allocation14 + $0x4] sm:$0x3] %v997_v0  ;;  %v187_v11 = vadd.f32 %v186_v4, %v1083_v1  ;;  %v193_v12 = vadd.f32 %v192_v5, %v1085_v2  ;;  %v330_v19 = vmul.f32 %v1102_v15, %v1083_v1  ;;  %v331_v20 = vmul.f32 %v1104_v16, %v1085_v2  ;;  %s998_s6 = smov [#allocation14]   ;;  %s709_s12 = sshll.u32 %s1278_s7, 4  ;;  %s710_s12 = int_to_ptr.hbm [resolvable:$true] %s709_s12 }
  0x22   :  { %171 = vst [vmem:[#allocation14 + $0x6] sm:$0x3] %v997_v0  ;;  %v249_v13 = vrot.slane %v247_v7, 4  ;;  %v270_v14 = vadd.f32 %v269_v8, %v1087_v3  ;;  %v255_v17 = vrot.slane %v248_v9, 4  ;;  %v276_v18 = vadd.f32 %v275_v10, %v1091_v6  ;;  %v1117_v8 = vld [vmem:[#allocation8] sm:$0xff]  ;;  %s707_s9 = sshll.u32 %s998_s6, 4  ;;  %s708_s9 = int_to_ptr.vmem [resolvable:$true] %s707_s9 }
  0x23   :  { %172 = vst [vmem:[#allocation14 + $0x8] sm:$0x3] %v997_v0  ;;  %v188_v21 = vrot.slane %v187_v11, 2  ;;  %v194_v22 = vrot.slane %v193_v12, 2  ;;  %v332_v27 = vrot.slane %v330_v19, 4  ;;  %v338_v28 = vrot.slane %v331_v20, 4 }
  0x24   :  { %173 = vst [vmem:[#allocation14 + $0xa] sm:$0x3] %v997_v0  ;;  %v250_v23 = vadd.f32 %v249_v13, %v247_v7  ;;  %v271_v24 = vrot.slane %v270_v14, 2  ;;  %v256_v25 = vadd.f32 %v255_v17, %v248_v9  ;;  %v277_v26 = vrot.slane %v276_v18, 2  ;;  %s999_s13 = smov 32   ;;  %s1000_s14 = smov 2  }
  0x25   :  { %174 = vst [vmem:[#allocation14 + $0xc] sm:$0x3] %v997_v0  ;;  %v189_v29 = vadd.f32 %v188_v21, %v187_v11  ;;  %v195_v30 = vadd.f32 %v194_v22, %v193_v12  ;;  %v333_v35 = vadd.f32 %v332_v27, %v330_v19  ;;  %v339_v36 = vadd.f32 %v338_v28, %v331_v20  ;;  %v1123_v19 = vld [vmem:[#allocation8 + $0x8] sm:$0xff] }
  0x26   :  { %175 = vst [vmem:[#allocation14 + $0xe] sm:$0x3] %v997_v0  ;;  %v251_v31 = vrot.slane %v250_v23, 2  ;;  %v272_v32 = vadd.f32 %v271_v24, %v270_v14  ;;  %v257_v33 = vrot.slane %v256_v25, 2  ;;  %v278_v34 = vadd.f32 %v277_v26, %v276_v18 }
  0x27   :  { %176 = vst [vmem:[#allocation14 + $0x10] sm:$0x3] %v997_v0  ;;  %v190_v37 = vrot.slane %v189_v29, 1  ;;  %v196_v38 = vrot.slane %v195_v30, 1  ;;  %v334_v43 = vrot.slane %v333_v35, 2  ;;  %v340_v44 = vrot.slane %v339_v36, 2 }
  0x28   :  { %177 = vst [vmem:[#allocation14 + $0x12] sm:$0x3] %v997_v0  ;;  %v252_v39 = vadd.f32 %v251_v31, %v250_v23  ;;  %v273_v40 = vrot.slane %v272_v32, 1  ;;  %v258_v41 = vadd.f32 %v257_v33, %v256_v25  ;;  %v279_v42 = vrot.slane %v278_v34, 1  ;;  %v185_v45 = vld [vmem:[#allocation14 + $0x2] sm:$0x3] }
  0x29   :  { %178 = vst [vmem:[#allocation14 + $0x14] sm:$0x3] %v997_v0  ;;  %v191_v46 = vadd.f32 %v190_v37, %v189_v29  ;;  %v197_v47 = vadd.f32 %v196_v38, %v195_v30  ;;  %v335_v53 = vadd.f32 %v334_v43, %v333_v35  ;;  %v341_v54 = vadd.f32 %v340_v44, %v339_v36  ;;  %v246_v60 = vld [vmem:[#allocation14 + $0x4] sm:$0x3]  ;;  %v329_v10 = vld [vmem:[#allocation14 + $0x6] sm:$0x3] }
  0x2a   :  { %179 = vst [vmem:[#allocation14 + $0x16] sm:$0x3] %v997_v0  ;;  %v253_v48 = vrot.slane %v252_v39, 1  ;;  %v274_v49 = vadd.f32 %v273_v40, %v272_v32  ;;  %v259_v50 = vrot.slane %v258_v41, 1  ;;  %v280_v52 = vadd.f32 %v279_v42, %v278_v34  ;;  %v1134_v34 = vld [vmem:[#allocation10] sm:$0xff]  ;;  %v1139_v43 = vld [vmem:[#allocation10 + $0x8] sm:$0xff] }
  0x2b   :  { %180 = vst [vmem:[#allocation14 + $0x18] sm:$0x3] %v997_v0  ;;  %v201_v55 = vsel %vm200_vm0, %v197_v47, %v191_v46  ;;  %v352_v57 = vrot.slane %v1102_v15, 4  ;;  %v358_v58 = vrot.slane %v1104_v16, 4  ;;  %v336_v63 = vrot.slane %v335_v53, 1 }
  0x2c   :  { %181 = vst [vmem:[#allocation14 + $0x1a] sm:$0x3] %v997_v0  ;;  %v254_v56 = vadd.f32 %v253_v48, %v252_v39  ;;  %v203_v59 = vadd.f32 %v201_v55, %v185_v45  ;;  %v260_v61 = vadd.f32 %v259_v50, %v258_v41  ;;  %v283_v62 = vsel %vm200_vm0, %v280_v52, %v274_v49 }
  0x2d   :  { %v342_v4 = vrot.slane %v341_v54, 1  ;;  %v353_v5 = vadd.f32 %v352_v57, %v1102_v15  ;;  %v359_v7 = vadd.f32 %v358_v58, %v1104_v16  ;;  %v337_v11 = vadd.f32 %v336_v63, %v335_v53 }
  0x2e   :  { %v268_v51 = vld [vmem:[#allocation14 + $0x10] sm:$0x3]  ;;  %204 = vst [vmem:[#allocation14 + $0x2] sm:$0x3] %v203_v59  ;;  %v263_v9 = vsel %vm200_vm0, %v260_v61, %v254_v56  ;;  %v413_v12 = vmul.f32 %v1117_v8, %v1083_v1  ;;  %738 = vlog2.f32 %v1087_v3  ;;  %v414_v20 = vmul.f32 %v1123_v19, %v1085_v2 }
  0x2f   :  { %v285_v0 = vadd.f32 %v283_v62, %v268_v51  ;;  %v265_v13 = vadd.f32 %v263_v9, %v246_v60  ;;  %v343_v14 = vadd.f32 %v342_v4, %v341_v54  ;;  %v354_v17 = vrot.slane %v353_v5, 2  ;;  %v351_v39 = vld [vmem:[#allocation14 + $0x12] sm:$0x3] }
  0x30   :  { %v360_v18 = vrot.slane %v359_v7, 2  ;;  %740 = vlog2.f32 %v1117_v8  ;;  %v415_v21 = vrot.slane %v413_v12, 4  ;;  %v435_v22 = vrot.slane %v1117_v8, 4  ;;  %v434_v9 = vld [vmem:[#allocation14 + $0x14] sm:$0x3] }
  0x31   :  { %286 = vst [vmem:[#allocation14 + $0x10] sm:$0x3] %v285_v0  ;;  %v346_v23 = vsel %vm200_vm0, %v343_v14, %v337_v11  ;;  %v355_v24 = vadd.f32 %v354_v17, %v353_v5  ;;  %v441_v26 = vrot.slane %v1123_v19, 4  ;;  %v421_v29 = vrot.slane %v414_v20, 4  ;;  %v1155_v14 = vld [vmem:[#allocation11] sm:$0xff] }
  0x32   :  { %266 = vst [vmem:[#allocation14 + $0x4] sm:$0x3] %v265_v13  ;;  %v361_v25 = vadd.f32 %v360_v18, %v359_v7  ;;  %v348_v27 = vadd.f32 %v346_v23, %v329_v10  ;;  %v416_v28 = vadd.f32 %v415_v21, %v413_v12  ;;  %v436_v30 = vadd.f32 %v435_v22, %v1117_v8  ;;  %v412_v17 = vld [vmem:[#allocation14 + $0x8] sm:$0x3] }
  0x33   :  { %v356_v31 = vrot.slane %v355_v24, 1  ;;  %742 = vlog2.f32 %v1123_v19  ;;  %v442_v33 = vadd.f32 %v441_v26, %v1123_v19  ;;  %v422_v37 = vadd.f32 %v421_v29, %v414_v20 }
  0x34   :  { %v362_v32 = vrot.slane %v361_v25, 1  ;;  %v1136_v35 = vpop.eup %738  ;;  %349 = vst [vmem:[#allocation14 + $0x6] sm:$0x3] %v348_v27  ;;  %v417_v36 = vrot.slane %v416_v28, 2  ;;  %v437_v38 = vrot.slane %v436_v30, 2  ;;  %744 = vlog2.f32 %v1134_v34 }
  0x35   :  { %v357_v40 = vadd.f32 %v356_v31, %v355_v24  ;;  %v443_v42 = vrot.slane %v442_v33, 2  ;;  %v496_v44 = vmul.f32 %v1134_v34, %v1083_v1  ;;  %v423_v47 = vrot.slane %v422_v37, 2 }
  0x36   :  { %v363_v41 = vadd.f32 %v362_v32, %v361_v25  ;;  %v1143_v45 = vpop.eup %740  ;;  %v418_v46 = vadd.f32 %v417_v36, %v416_v28  ;;  %v438_v48 = vadd.f32 %v437_v38, %v436_v30  ;;  %v497_v49 = vmul.f32 %v1139_v43, %v1085_v2 }
  0x37   :  { %v444_v51 = vadd.f32 %v443_v42, %v442_v33  ;;  %v498_v52 = vrot.slane %v496_v44, 4  ;;  %v518_v53 = vrot.slane %v1134_v34, 4  ;;  %v424_v56 = vadd.f32 %v423_v47, %v422_v37  ;;  %v1164_v33 = vld [vmem:[#allocation11 + $0x8] sm:$0xff] }
  0x38   :  { %v366_v50 = vsel %vm200_vm0, %v363_v41, %v357_v40  ;;  %v419_v55 = vrot.slane %v418_v46, 1  ;;  %v439_v57 = vrot.slane %v438_v48, 1  ;;  %v504_v61 = vrot.slane %v497_v49, 4 }
  0x39   :  { %v368_v54 = vadd.f32 %v366_v50, %v351_v39  ;;  %v1149_v58 = vpop.eup %742  ;;  %v445_v59 = vrot.slane %v444_v51, 1  ;;  %v499_v60 = vadd.f32 %v498_v52, %v496_v44  ;;  %v519_v62 = vadd.f32 %v518_v53, %v1134_v34  ;;  %v1175_v52 = vld [vmem:[#allocation13 + $0x8] sm:$0xff]  ;;  %v495_v53 = vld [vmem:[#allocation14 + $0xa] sm:$0x3] }
  0x3a   :  { %v1152_v63 = vpop.eup %744  ;;  %v420_v0 = vadd.f32 %v419_v55, %v418_v46  ;;  %v425_v4 = vrot.slane %v424_v56, 1  ;;  %v440_v5 = vadd.f32 %v439_v57, %v438_v48  ;;  %v524_v7 = vrot.slane %v1139_v43, 4 }
  0x3b   :  { %369 = vst [vmem:[#allocation14 + $0x12] sm:$0x3] %v368_v54  ;;  %v446_v10 = vadd.f32 %v445_v59, %v444_v51  ;;  %v500_v11 = vrot.slane %v499_v60, 2  ;;  %v505_v12 = vadd.f32 %v504_v61, %v497_v49  ;;  %v520_v13 = vrot.slane %v519_v62, 2  ;;  %v1173_v51 = vld [vmem:[#allocation13] sm:$0xff] }
  0x3c   :  { %v426_v18 = vadd.f32 %v425_v4, %v424_v56  ;;  %746 = vlog2.f32 %v1139_v43  ;;  %v525_v20 = vadd.f32 %v524_v7, %v1139_v43  ;;  %v579_v21 = vmul.f32 %v1155_v14, %v1083_v1 }
  0x3d   :  { %v449_v22 = vsel %vm200_vm0, %v446_v10, %v440_v5  ;;  %v501_v23 = vadd.f32 %v500_v11, %v499_v60  ;;  %v506_v24 = vrot.slane %v505_v12, 2  ;;  %v521_v25 = vadd.f32 %v520_v13, %v519_v62  ;;  %v517_v60 = vld [vmem:[#allocation14 + $0x16] sm:$0x3] }
  0x3e   :  { %v429_v26 = vsel %vm200_vm0, %v426_v18, %v420_v0  ;;  %v451_v27 = vadd.f32 %v449_v22, %v434_v9  ;;  %v526_v28 = vrot.slane %v525_v20, 2  ;;  %748 = vlog2.f32 %v1155_v14 }
  0x3f   :  { %v431_v29 = vadd.f32 %v429_v26, %v412_v17  ;;  %v502_v30 = vrot.slane %v501_v23, 1  ;;  %v507_v31 = vadd.f32 %v506_v24, %v505_v12  ;;  %v522_v32 = vrot.slane %v521_v25, 1 }
  0x40   :  { %452 = vst [vmem:[#allocation14 + $0x14] sm:$0x3] %v451_v27  ;;  %v527_v36 = vadd.f32 %v526_v28, %v525_v20  ;;  %v580_v37 = vmul.f32 %v1164_v33, %v1085_v2  ;;  %v581_v38 = vrot.slane %v579_v21, 4  ;;  %v601_v39 = vrot.slane %v1155_v14, 4 }
  0x41   :  { %432 = vst [vmem:[#allocation14 + $0x8] sm:$0x3] %v431_v29  ;;  %v503_v40 = vadd.f32 %v502_v30, %v501_v23  ;;  %v508_v41 = vrot.slane %v507_v31, 1  ;;  %v523_v42 = vadd.f32 %v522_v32, %v521_v25  ;;  %v607_v44 = vrot.slane %v1164_v33, 4 }
  0x42   :  { %v1170_v46 = vpop.eup %746  ;;  %v528_v47 = vrot.slane %v527_v36, 1  ;;  %v582_v48 = vadd.f32 %v581_v38, %v579_v21  ;;  %v587_v49 = vrot.slane %v580_v37, 4  ;;  %v602_v50 = vadd.f32 %v601_v39, %v1155_v14  ;;  %v600_v38 = vld [vmem:[#allocation14 + $0x18] sm:$0x3] }
  0x43   :  { %v509_v54 = vadd.f32 %v508_v41, %v507_v31  ;;  %v608_v55 = vadd.f32 %v607_v44, %v1164_v33  ;;  %v662_v56 = vmul.f32 %v1173_v51, %v1083_v1  ;;  %v663_v57 = vmul.f32 %v1175_v52, %v1085_v2  ;;  %v578_v44 = vld [vmem:[#allocation14 + $0xc] sm:$0x3] }
  0x44   :  { %v1182_v59 = vpop.eup %748  ;;  %v529_v61 = vadd.f32 %v528_v47, %v527_v36  ;;  %v583_v62 = vrot.slane %v582_v48, 2  ;;  %v588_v0 = vadd.f32 %v587_v49, %v580_v37  ;;  %v603_v4 = vrot.slane %v602_v50, 2 }
  0x45   :  { %v512_v5 = vsel %vm200_vm0, %v509_v54, %v503_v40  ;;  %v609_v7 = vrot.slane %v608_v55, 2  ;;  %v664_v9 = vrot.slane %v662_v56, 4  ;;  %v670_v10 = vrot.slane %v663_v57, 4 }
  0x46   :  { %v514_v11 = vadd.f32 %v512_v5, %v495_v53  ;;  %v532_v12 = vsel %vm200_vm0, %v529_v61, %v523_v42  ;;  %v584_v13 = vadd.f32 %v583_v62, %v582_v48  ;;  %v589_v17 = vrot.slane %v588_v0, 2  ;;  %v661_v62 = vld [vmem:[#allocation14 + $0xe] sm:$0x3] }
  0x47   :  { %v534_v18 = vadd.f32 %v532_v12, %v517_v60  ;;  %v604_v20 = vadd.f32 %v603_v4, %v602_v50  ;;  %v610_v21 = vadd.f32 %v609_v7, %v608_v55  ;;  %v665_v22 = vadd.f32 %v664_v9, %v662_v56 }
  0x48   :  { %515 = vst [vmem:[#allocation14 + $0xa] sm:$0x3] %v514_v11  ;;  %v585_v23 = vrot.slane %v584_v13, 1  ;;  %v590_v24 = vadd.f32 %v589_v17, %v588_v0  ;;  %v671_v25 = vadd.f32 %v670_v10, %v663_v57  ;;  %v684_v26 = vrot.slane %v1173_v51, 4 }
  0x49   :  { %535 = vst [vmem:[#allocation14 + $0x16] sm:$0x3] %v534_v18  ;;  %v605_v27 = vrot.slane %v604_v20, 1  ;;  %v611_v28 = vrot.slane %v610_v21, 1  ;;  %v666_v29 = vrot.slane %v665_v22, 2  ;;  %v690_v30 = vrot.slane %v1175_v52, 4 }
  0x4a   :  { %v586_v31 = vadd.f32 %v585_v23, %v584_v13  ;;  %v591_v32 = vrot.slane %v590_v24, 1  ;;  %v672_v36 = vrot.slane %v671_v25, 2  ;;  %v685_v37 = vadd.f32 %v684_v26, %v1173_v51  ;;  %v683_v23 = vld [vmem:[#allocation14 + $0x1a] sm:$0x3] }
  0x4b   :  { %v606_v39 = vadd.f32 %v605_v27, %v604_v20  ;;  %v612_v40 = vadd.f32 %v611_v28, %v610_v21  ;;  %v667_v41 = vadd.f32 %v666_v29, %v665_v22  ;;  %v691_v42 = vadd.f32 %v690_v30, %v1175_v52 }
  0x4c   :  { %750 = vlog2.f32 %v1164_v33  ;;  %v592_v47 = vadd.f32 %v591_v32, %v590_v24  ;;  %v673_v48 = vadd.f32 %v672_v36, %v671_v25  ;;  %v686_v49 = vrot.slane %v685_v37, 2 }
  0x4d   :  { %v615_v50 = vsel %vm200_vm0, %v612_v40, %v606_v39  ;;  %v668_v53 = vrot.slane %v667_v41, 1  ;;  %v692_v54 = vrot.slane %v691_v42, 2  ;;  %752 = vlog2.f32 %v1091_v6 }
  0x4e   :  { %v595_v55 = vsel %vm200_vm0, %v592_v47, %v586_v31  ;;  %v617_v56 = vadd.f32 %v615_v50, %v600_v38  ;;  %v674_v57 = vrot.slane %v673_v48, 1  ;;  %v687_v60 = vadd.f32 %v686_v49, %v685_v37 }
  0x4f   :  { %v597_v61 = vadd.f32 %v595_v55, %v578_v44  ;;  %v669_v0 = vadd.f32 %v668_v53, %v667_v41  ;;  %v693_v4 = vadd.f32 %v692_v54, %v691_v42  ;;  %v1195_v5 = vmul.f32 0.6931472, %v1136_v35 }
  0x50   :  { %618 = vst [vmem:[#allocation14 + $0x18] sm:$0x3] %v617_v56  ;;  %v675_v7 = vadd.f32 %v674_v57, %v673_v48  ;;  %v688_v9 = vrot.slane %v687_v60, 1  ;;  %v214_v10 = vsub.f32 1.0, %v1087_v3  ;;  %v215_v11 = vsub.f32 1.0, %v1091_v6 }
  0x51   :  { %598 = vst [vmem:[#allocation14 + $0xc] sm:$0x3] %v597_v61  ;;  %v694_v12 = vrot.slane %v693_v4, 1  ;;  %754 = vlog2.f32 %v1102_v15  ;;  %v295_v13 = vsub.f32 1.0, %v1102_v15  ;;  %v296_v17 = vsub.f32 1.0, %v1104_v16 }
  0x52   :  { %v751_v18 = vpop.eup %750  ;;  %v678_v20 = vsel %vm200_vm0, %v675_v7, %v669_v0  ;;  %v689_v35 = vadd.f32 %v688_v9, %v687_v60  ;;  %756 = vlog2.f32 %v214_v10  ;;  %v1204_v21 = vmul.f32 0.6931472, %v1143_v45 }
  0x53   :  { %v753_v22 = vpop.eup %752  ;;  %v680_v3 = vadd.f32 %v678_v20, %v661_v62  ;;  %v695_v6 = vadd.f32 %v694_v12, %v693_v4  ;;  %758 = vlog2.f32 %v215_v11  ;;  %v1207_v24 = vmul.f32 0.6931472, %v1149_v58 }
  0x54   :  { %v211_v25 = vmul.f32 0.6931472, %v753_v22  ;;  %v212_v15 = vmax.f32 %v1195_v5, -100.0  ;;  %760 = vlog2.f32 %v1104_v16  ;;  %v378_v26 = vsub.f32 1.0, %v1117_v8 }
  0x55   :  { %681 = vst [vmem:[#allocation14 + $0xe] sm:$0x3] %v680_v3  ;;  %v698_v27 = vsel %vm200_vm0, %v695_v6, %v689_v35  ;;  %762 = vlog2.f32 %v295_v13  ;;  %v376_v45 = vmax.f32 %v1204_v21, -100.0  ;;  %v379_v28 = vsub.f32 1.0, %v1123_v19 }
  0x56   :  { %v700_v29 = vadd.f32 %v698_v27, %v683_v23  ;;  %764 = vlog2.f32 %v296_v17  ;;  %v377_v58 = vmax.f32 %v1207_v24, -100.0  ;;  %v1217_v30 = vmul.f32 0.6931472, %v1152_v63 }
  0x57   :  { %v755_v31 = vpop.eup %754  ;;  %766 = vlog2.f32 %v378_v26  ;;  %v1220_v16 = vmul.f32 0.6931472, %v1170_v46  ;;  %v461_v8 = vsub.f32 1.0, %v1134_v34  ;;  %v462_v32 = vsub.f32 1.0, %v1139_v43 }
  0x58   :  { %v757_v36 = vpop.eup %756  ;;  %701 = vst [vmem:[#allocation14 + $0x1a] sm:$0x3] %v700_v29  ;;  %v213_v37 = vmax.f32 %v211_v25, -100.0  ;;  %v290_v19 = vmul.f32 0.6931472, %v755_v31  ;;  %768 = vlog2.f32 %v379_v28  ;;  %v459_v38 = vmax.f32 %v1217_v30, -100.0 }
  0x59   :  { %v759_v39 = vpop.eup %758  ;;  %v217_v40 = vmul.f32 0.6931472, %v757_v36  ;;  %770 = vlog2.f32 %v461_v8  ;;  %v1226_v63 = vmul.f32 0.6931472, %v1182_v59  ;;  %v544_v46 = vsub.f32 1.0, %v1155_v14 }
  0x5a   :  { %v761_v41 = vpop.eup %760  ;;  %v219_v42 = vmul.f32 0.6931472, %v759_v39  ;;  %v460_v34 = vmax.f32 %v1220_v16, -100.0  ;;  %772 = vlog2.f32 %v462_v32  ;;  %v1230_v43 = vmul.f32 0.6931472, %v751_v18 }
  0x5b   :  { %v763_v44 = vpop.eup %762  ;;  %v220_v47 = vmax.f32 %v217_v40, -100.0  ;;  %v292_v48 = vmul.f32 0.6931472, %v761_v41  ;;  %v293_v49 = vmax.f32 %v290_v19, -100.0  ;;  %v545_v50 = vsub.f32 1.0, %v1164_v33 }
  0x5c   :  { %v765_v53 = vpop.eup %764  ;;  %v221_v54 = vmax.f32 %v219_v42, -100.0  ;;  %v298_v55 = vmul.f32 0.6931472, %v763_v44  ;;  %v542_v59 = vmax.f32 %v1226_v63, -100.0  ;;  %v543_v14 = vmax.f32 %v1230_v43, -100.0 }
  0x5d   :  { %v767_v56 = vpop.eup %766  ;;  %v222_v57 = vsub.f32 %v212_v15, %v220_v47  ;;  %v294_v60 = vmax.f32 %v292_v48, -100.0  ;;  %v300_v61 = vmul.f32 0.6931472, %v765_v53  ;;  %774 = vlog2.f32 %v544_v46 }
  0x5e   :  { %v769_v62 = vpop.eup %768  ;;  %v223_v0 = vsub.f32 %v213_v37, %v221_v54  ;;  %v301_v4 = vmax.f32 %v298_v55, -100.0  ;;  %v381_v5 = vmul.f32 0.6931472, %v767_v56  ;;  %776 = vlog2.f32 %v545_v50 }
  0x5f   :  { %v771_v7 = vpop.eup %770  ;;  %v224_v33 = vmul.f32 %v222_v57, %v1083_v1  ;;  %v302_v9 = vmax.f32 %v300_v61, -100.0  ;;  %v383_v10 = vmul.f32 0.6931472, %v769_v62  ;;  %778 = vlog2.f32 %v1173_v51 }
  0x60   :  { %v773_v11 = vpop.eup %772  ;;  %v225_v12 = vmul.f32 %v223_v0, %v1085_v2  ;;  %v303_v13 = vsub.f32 %v293_v49, %v301_v4  ;;  %v384_v17 = vmax.f32 %v381_v5, -100.0  ;;  %v464_v18 = vmul.f32 0.6931472, %v771_v7 }
  0x61   :  { %v226_v20 = vadd.f32 %v224_v33, %v220_v47  ;;  %v304_v35 = vsub.f32 %v294_v60, %v302_v9  ;;  %v385_v22 = vmax.f32 %v383_v10, -100.0  ;;  %v466_v3 = vmul.f32 0.6931472, %v773_v11 }
  0x62   :  { %v227_v23 = vadd.f32 %v225_v12, %v221_v54  ;;  %v305_v6 = vmul.f32 %v303_v13, %v1083_v1  ;;  %v386_v25 = vsub.f32 %v376_v45, %v384_v17  ;;  %v467_v15 = vmax.f32 %v464_v18, -100.0  ;;  %v205_v18 = vld [vmem:[#allocation14] sm:$0x3] }
  0x63   :  { %v775_v26 = vpop.eup %774  ;;  %v228_v27 = vrot.slane %v226_v20, 4  ;;  %v306_v28 = vmul.f32 %v304_v35, %v1085_v2  ;;  %v387_v29 = vsub.f32 %v377_v58, %v385_v22  ;;  %v468_v30 = vmax.f32 %v466_v3, -100.0 }
  0x64   :  { %v777_v31 = vpop.eup %776  ;;  %v234_v16 = vrot.slane %v227_v23, 4  ;;  %v307_v8 = vadd.f32 %v305_v6, %v301_v4  ;;  %v388_v32 = vmul.f32 %v386_v25, %v1083_v1  ;;  %v469_v36 = vsub.f32 %v459_v38, %v467_v15 }
  0x65   :  { %v1245_v37 = vpop.eup %778  ;;  %v229_v19 = vadd.f32 %v228_v27, %v226_v20  ;;  %v308_v21 = vadd.f32 %v306_v28, %v302_v9  ;;  %v389_v45 = vmul.f32 %v387_v29, %v1085_v2  ;;  %v470_v39 = vsub.f32 %v460_v34, %v468_v30 }
  0x66   :  { %v235_v40 = vadd.f32 %v234_v16, %v227_v23  ;;  %v309_v46 = vrot.slane %v307_v8, 4  ;;  %v390_v41 = vadd.f32 %v388_v32, %v384_v17  ;;  %v471_v24 = vmul.f32 %v469_v36, %v1083_v1 }
  0x67   :  { %v230_v58 = vrot.slane %v229_v19, 2  ;;  %v315_v42 = vrot.slane %v308_v21, 4  ;;  %v391_v44 = vadd.f32 %v389_v45, %v385_v22  ;;  %v472_v47 = vmul.f32 %v470_v39, %v1085_v2 }
  0x68   :  { %v236_v48 = vrot.slane %v235_v40, 2  ;;  %v310_v49 = vadd.f32 %v309_v46, %v307_v8  ;;  %v392_v38 = vrot.slane %v390_v41, 4  ;;  %v473_v50 = vadd.f32 %v471_v24, %v467_v15 }
  0x69   :  { %v231_v53 = vadd.f32 %v230_v58, %v229_v19  ;;  %v316_v54 = vadd.f32 %v315_v42, %v308_v21  ;;  %v398_v55 = vrot.slane %v391_v44, 4  ;;  %v474_v56 = vadd.f32 %v472_v47, %v468_v30 }
  0x6a   :  { %v237_v57 = vadd.f32 %v236_v48, %v235_v40  ;;  %v311_v34 = vrot.slane %v310_v49, 2  ;;  %v393_v60 = vadd.f32 %v392_v38, %v390_v41  ;;  %v475_v61 = vrot.slane %v473_v50, 4 }
  0x6b   :  { %v232_v62 = vrot.slane %v231_v53, 1  ;;  %v317_v0 = vrot.slane %v316_v54, 2  ;;  %v399_v4 = vadd.f32 %v398_v55, %v391_v44  ;;  %v481_v5 = vrot.slane %v474_v56, 4 }
  0x6c   :  { %v238_v7 = vrot.slane %v237_v57, 1  ;;  %v312_v33 = vadd.f32 %v311_v34, %v310_v49  ;;  %v394_v9 = vrot.slane %v393_v60, 2  ;;  %v476_v10 = vadd.f32 %v475_v61, %v473_v50 }
  0x6d   :  { %v233_v11 = vadd.f32 %v232_v62, %v231_v53  ;;  %v318_v12 = vadd.f32 %v317_v0, %v316_v54  ;;  %v400_v13 = vrot.slane %v399_v4, 2  ;;  %v482_v17 = vadd.f32 %v481_v5, %v474_v56 }
  0x6e   :  { %v239_v20 = vadd.f32 %v238_v7, %v237_v57  ;;  %v313_v35 = vrot.slane %v312_v33, 1  ;;  %v395_v22 = vadd.f32 %v394_v9, %v393_v60  ;;  %v477_v3 = vrot.slane %v476_v10, 2 }
  0x6f   :  { %v319_v23 = vrot.slane %v318_v12, 1  ;;  %v401_v6 = vadd.f32 %v400_v13, %v399_v4  ;;  %v483_v25 = vrot.slane %v482_v17, 2  ;;  %v547_v15 = vmul.f32 0.6931472, %v775_v26 }
  0x70   :  { %v242_v27 = vsel %vm200_vm0, %v239_v20, %v233_v11  ;;  %v314_v28 = vadd.f32 %v313_v35, %v312_v33  ;;  %v396_v29 = vrot.slane %v395_v22, 1  ;;  %v478_v30 = vadd.f32 %v477_v3, %v476_v10 }
  0x71   :  { %v244_v16 = vadd.f32 %v242_v27, %v205_v18  ;;  %v320_v8 = vadd.f32 %v319_v23, %v318_v12  ;;  %v402_v32 = vrot.slane %v401_v6, 1  ;;  %v484_v36 = vadd.f32 %v483_v25, %v482_v17 }
  0x72   :  { %v321_v19 = vmul.f32 0.1, %v314_v28  ;;  %v397_v21 = vadd.f32 %v396_v29, %v395_v22  ;;  %v479_v45 = vrot.slane %v478_v30, 1  ;;  %v549_v39 = vmul.f32 0.6931472, %v777_v31 }
  0x73   :  { %v322_v40 = vmul.f32 0.1, %v320_v8  ;;  %v403_v46 = vadd.f32 %v402_v32, %v401_v6  ;;  %v485_v41 = vrot.slane %v484_v36, 1  ;;  %v550_v24 = vmax.f32 %v547_v15, -100.0 }
  0x74   :  { %v404_v58 = vmul.f32 0.2, %v397_v21  ;;  %v480_v42 = vadd.f32 %v479_v45, %v478_v30  ;;  %v551_v26 = vmax.f32 %v549_v39, -100.0  ;;  %780 = vlog2.f32 %v1175_v52 }
  0x75   :  { %v325_v44 = vsel %vm200_vm0, %v322_v40, %v321_v19  ;;  %v405_v47 = vmul.f32 0.2, %v403_v46  ;;  %v486_v48 = vadd.f32 %v485_v41, %v484_v36  ;;  %v552_v49 = vsub.f32 %v542_v59, %v550_v24 }
  0x76   :  { %v327_v38 = vadd.f32 %v325_v44, %v244_v16  ;;  %v487_v50 = vmul.f32 0.3, %v480_v42  ;;  %v553_v31 = vsub.f32 %v543_v14, %v551_v26  ;;  %v627_v34 = vsub.f32 1.0, %v1173_v51 }
  0x77   :  { %v408_v53 = vsel %vm200_vm0, %v405_v47, %v404_v58  ;;  %v488_v54 = vmul.f32 0.3, %v486_v48  ;;  %v554_v55 = vmul.f32 %v552_v49, %v1083_v1  ;;  %v628_v63 = vsub.f32 1.0, %v1175_v52 }
  0x78   :  { %v410_v56 = vadd.f32 %v408_v53, %v327_v38  ;;  %v555_v57 = vmul.f32 %v553_v31, %v1085_v2  ;;  %782 = vlog2.f32 %v627_v34  ;;  %v622_v5 = vmul.f32 0.6931472, %v1245_v37 }
  0x79   :  { %v491_v60 = vsel %vm200_vm0, %v488_v54, %v487_v50  ;;  %v556_v61 = vadd.f32 %v554_v55, %v550_v24  ;;  %784 = vlog2.f32 %v628_v63 }
  0x7a   :  { %v781_v59 = vpop.eup %780  ;;  %v493_v62 = vadd.f32 %v491_v60, %v410_v56  ;;  %v557_v0 = vadd.f32 %v555_v57, %v551_v26  ;;  %v625_v12 = vmax.f32 %v622_v5, -100.0 }
  0x7b   :  { %v558_v43 = vrot.slane %v556_v61, 4  ;;  %v624_v33 = vmul.f32 0.6931472, %v781_v59 }
  0x7c   :  { %v564_v14 = vrot.slane %v557_v0, 4 }
  0x7d   :  { %v559_v4 = vadd.f32 %v558_v43, %v556_v61  ;;  %v626_v17 = vmax.f32 %v624_v33, -100.0 }
  0x7e   :  { %v565_v7 = vadd.f32 %v564_v14, %v557_v0  ;;  %v783_v9 = vpop.eup %782 }
  0x7f   :  { %v560_v10 = vrot.slane %v559_v4, 2  ;;  %v785_v11 = vpop.eup %784  ;;  %v630_v13 = vmul.f32 0.6931472, %v783_v9 }
  0x80   :  { %v566_v51 = vrot.slane %v565_v7, 2  ;;  %v632_v52 = vmul.f32 0.6931472, %v785_v11 }
  0x81   :  { %v633_v18 = vmax.f32 %v630_v13, -100.0  ;;  %v561_v20 = vadd.f32 %v560_v10, %v559_v4 }
  0x82   :  { %v567_v35 = vadd.f32 %v566_v51, %v565_v7  ;;  %v634_v22 = vmax.f32 %v632_v52, -100.0 }
  0x83   :  { %v635_v3 = vsub.f32 %v625_v12, %v633_v18  ;;  %v562_v25 = vrot.slane %v561_v20, 1 }
  0x84   :  { %v636_v23 = vsub.f32 %v626_v17, %v634_v22  ;;  %v568_v37 = vrot.slane %v567_v35, 1 }
  0x85   :  { %v637_v6 = vmul.f32 %v635_v3, %v1083_v1  ;;  %v563_v30 = vadd.f32 %v562_v25, %v561_v20 }
  0x86   :  { %v638_v15 = vmul.f32 %v636_v23, %v1085_v2  ;;  %v569_v16 = vadd.f32 %v568_v37, %v567_v35 }
  0x87   :  { %v639_v27 = vadd.f32 %v637_v6, %v633_v18  ;;  %v570_v21 = vmul.f32 0.4, %v563_v30 }
  0x88   :  { %v640_v28 = vadd.f32 %v638_v15, %v634_v22  ;;  %v571_v45 = vmul.f32 0.4, %v569_v16 }
  0x89   :  { %v641_v29 = vrot.slane %v639_v27, 4 }
  0x8a   :  { %v647_v8 = vrot.slane %v640_v28, 4  ;;  %v574_v1 = vsel %vm200_vm0, %v571_v45, %v570_v21 }
  0x8b   :  { %v642_v32 = vadd.f32 %v641_v29, %v639_v27  ;;  %v576_v42 = vadd.f32 %v574_v1, %v493_v62 }
  0x8c   :  { %v648_v36 = vadd.f32 %v647_v8, %v640_v28 }
  0x8d   :  { %v643_v19 = vrot.slane %v642_v32, 2 }
  0x8e   :  { %v649_v39 = vrot.slane %v648_v36, 2 }
  0x8f   :  { %v644_v40 = vadd.f32 %v643_v19, %v642_v32 }
  0x90   :  { %v650_v46 = vadd.f32 %v649_v39, %v648_v36 }
  0x91   :  { %v645_v41 = vrot.slane %v644_v40, 1 }
  0x92   :  { %v651_v24 = vrot.slane %v650_v46, 1 }
  0x93   :  { %v646_v58 = vadd.f32 %v645_v41, %v644_v40 }
  0x94   :  { %v652_v2 = vadd.f32 %v651_v24, %v650_v46 }
  0x95   :  { %v653_v26 = vmul.f32 0.5, %v646_v58 }
  0x96   :  { %v654_v44 = vmul.f32 0.5, %v652_v2 }
  0x98   :  { %v657_v47 = vsel %vm200_vm0, %v654_v44, %v653_v26 }
  0x99   :  { %v659_v48 = vadd.f32 %v657_v47, %v576_v42 }
  0x9b   :  { %702 = vst [vmem:[#allocation14] sm:$0x3] %v659_v48 }
  0x9c   :  { %715 = dma.vmem_to_hbm [thread:$0]  %s708_s9, 448, %s710_s12, [#allocation4], %s999_s13, %s999_s13, %s1000_s14  }
  0x9d   :  { %986 = dma.done.wait [#allocation4], 448  }
  0x9e   :  { %987 = vsyncadd [#allocation4], 4294966848 }
  0x9f   :  { %720 = vsyncpa [#allocation3], 1 }
  0xa0   :  { %721 = vsyncpa [#allocation6], 1 }
  0xa1   :  { %722 = vsyncpa [#allocation9], 1 }
  0xa2   :  { %723 = vsyncpa [#allocation12], 1 }
  0xa3   :  { %724 = vsyncpa [#allocation4], 1 }

</bundles_post_ra>
